<compile_context>
chip_gen: v6e
topology: v6e:2x2x1
jax: 0.10.0
libtpu: 0.0.40
codegen_flags: <defaults>
</compile_context>

<pallas_src>
import jax
import jax.numpy as jnp
from jax.experimental import pallas as pl
from jax.experimental.pallas import tpu as pltpu

HIDDEN = 768          # fixed by nn.Linear(768, 768) in the module
_TILE_B_CAP = 2048    # 2 inputs x 2 buffers x 2048 x 768 x 4B = 24 MiB
_VMEM_LIMIT = 30 * 1024 * 1024  # covers the 2048-row tile on all generations


def _npcr_fused_kernel(x0_ref, x1_ref, wf_ref, y_ref):
    # x0_ref, x1_ref : (tb, 768) pooled embeddings (batch tile), f32 or bf16
    # wf_ref         : (1, 768)  fused weight row (w1 @ wo).T, VMEM-resident
    # y_ref          : (1, tb)   lane-dense output row for this tile
    x0 = x0_ref[...].astype(jnp.float32)          # no-op for f32 inputs
    x1 = x1_ref[...].astype(jnp.float32)
    diff = x0 - x1                                # VPU
    # matvec as VPU multiply + cross-lane reduce (avoids an N=1 MXU pass)
    logits = jnp.sum(diff * wf_ref[...], axis=-1, keepdims=True)   # (tb, 1)
    probs = jax.nn.sigmoid(logits)                                  # EUP
    # (tb,1) -> (1,tb): XLU transpose (idle slots) => unmasked lane-dense store
    y_ref[...] = jnp.transpose(probs).astype(y_ref.dtype)


def fold_output_weights(w1, wo):
    """Fold nn1 and output weights ONCE at model load (not per forward call).

    Eval-mode dropout is identity and the shared nn1 bias cancels exactly in
    (h0 - h1), so:  y = sigmoid((x0 - x1) @ (w1 @ wo)).
    """
    w1 = jnp.asarray(w1, jnp.float32)
    wo = jnp.asarray(wo, jnp.float32)
    return (w1 @ wo).reshape(1, HIDDEN)


def _select_tile_b(B):
    """Batch-tile selection: single full block for small B; otherwise >= 2
    tiles (dual-TC on v7x), capped at 2048 rows (VMEM-safe on v5e/v6e/v7x)."""
    if B <= 1024:
        return B, 1
    half = -(-B // 2)                         # cdiv(B, 2)
    tb = min(_TILE_B_CAP, ((half + 7) // 8) * 8)   # sublane-aligned
    n_tiles = -(-B // tb)
    return tb, n_tiles


def npcr_forward(x0_embed, x1_embed, w_fused, *, tile_b=None):
    """x0_embed, x1_embed: (B, 768) float32/bfloat16 pooled BERT embeddings.
    w_fused: (1, 768) from fold_output_weights (precomputed at model load).
    Returns (B, 1) float32 probabilities."""
    B, H = x0_embed.shape
    assert H == HIDDEN
    assert w_fused.shape == (1, HIDDEN)

    if tile_b is None:
        tb, n_tiles = _select_tile_b(B)
    elif B <= tile_b:
        tb, n_tiles = B, 1
    else:
        assert tile_b % 8 == 0, "tile_b must be sublane-aligned (multiple of 8)"
        tb, n_tiles = tile_b, -(-B // tile_b)

    itemsize = jnp.dtype(x0_embed.dtype).itemsize
    cost = pl.CostEstimate(
        flops=3 * B * HIDDEN,                       # sub + mul + reduce-add
        transcendentals=B,                          # sigmoid
        bytes_accessed=2 * B * HIDDEN * itemsize + HIDDEN * 4 + B * 4,
    )

    # No jnp.pad: ragged last block reads overhang rows (discarded below).
    y = pl.pallas_call(
        _npcr_fused_kernel,
        out_shape=jax.ShapeDtypeStruct((n_tiles, tb), jnp.float32),
        grid=(n_tiles,),
        in_specs=[
            pl.BlockSpec((tb, HIDDEN), lambda i: (i, 0)),
            pl.BlockSpec((tb, HIDDEN), lambda i: (i, 0)),
            pl.BlockSpec((1, HIDDEN), lambda i: (0, 0)),  # constant: VMEM-resident
        ],
        out_specs=pl.BlockSpec((1, tb), lambda i: (i, 0)),  # lane-dense row
        compiler_params=pltpu.CompilerParams(
            dimension_semantics=("parallel",),
            vmem_limit_bytes=_VMEM_LIMIT,
        ),
        cost_estimate=cost,
    )(x0_embed, x1_embed, w_fused)

    return y.reshape(n_tiles * tb, 1)[:B]


def init_params(key):
    """Deterministic synthetic init for nn1 (Linear 768->768) and output
    (Linear 768->1, no bias), PyTorch-default U(-1/sqrt(fan_in), 1/sqrt(fan_in))."""
    k1, k2, k3 = jax.random.split(key, 3)
    bound = 1.0 / jnp.sqrt(jnp.float32(HIDDEN))
    w1 = jax.random.uniform(k1, (HIDDEN, HIDDEN), jnp.float32, -bound, bound)  # (in, out)
    b1 = jax.random.uniform(k2, (HIDDEN,), jnp.float32, -bound, bound)
    wo = jax.random.uniform(k3, (HIDDEN, 1), jnp.float32, -bound, bound)       # (in, out)
    return w1, b1, wo


if __name__ == "__main__":
    key = jax.random.PRNGKey(0)
    kp, kx0, kx1, ky0, ky1 = jax.random.split(key, 5)

    w1, b1, wo = init_params(kp)
    w_fused = fold_output_weights(w1, wo)   # once, at "model load" time

    def ref_forward(x0, x1):
        # Faithful (un-fused) eval-mode forward math.
        return jax.nn.sigmoid(((x0 @ w1 + b1) - (x1 @ w1 + b1)) @ wo)

    # 1) Small batch: single full-array tile.
    B = 8
    x0_embed = jax.random.normal(kx0, (B, HIDDEN), jnp.float32)
    x1_embed = jax.random.normal(kx1, (B, HIDDEN), jnp.float32)
    y = jax.block_until_ready(npcr_forward(x0_embed, x1_embed, w_fused))
    assert y.shape == (B, 1)
    assert jnp.allclose(y, ref_forward(x0_embed, x1_embed), atol=1e-5), "mismatch (small B)"

    # 2) Gridded path with ragged last block (no jnp.pad), still small shapes:
    #    40 rows with 16-row tiles -> 3 tiles, last tile half-valid.
    B2 = 40
    x0b = jax.random.normal(ky0, (B2, HIDDEN), jnp.float32)
    x1b = jax.random.normal(ky1, (B2, HIDDEN), jnp.float32)
    y2 = jax.block_until_ready(npcr_forward(x0b, x1b, w_fused, tile_b=16))
    assert y2.shape == (B2, 1)
    assert jnp.allclose(y2, ref_forward(x0b, x1b), atol=1e-5), "mismatch (gridded/ragged)"

    print("KERNEL_OK")
</pallas_src>

<mosaic_0001>
module attributes {stable_mosaic.version = 11 : i64} {
  func.func @_npcr_fused_kernel(%arg0: i32, %arg1: memref<8x768xf32, #tpu.memory_space<vmem>>, %arg2: memref<8x768xf32, #tpu.memory_space<vmem>>, %arg3: memref<1x768xf32, #tpu.memory_space<vmem>>, %arg4: memref<1x8xf32, #tpu.memory_space<vmem>>) attributes {dimension_semantics = [#tpu.dimension_semantics<parallel>], iteration_bounds = array<i64: 1>, scalar_prefetch = 0 : i64, scratch_operands = 0 : i64, tpu.core_type = #tpu.core_type<tc>, window_params = [{transform_indices = @transform_0, window_bounds = array<i64: 8, 768>}, {transform_indices = @transform_1, window_bounds = array<i64: 8, 768>}, {pipeline_mode = #tpu.pipeline_mode<synchronous>, transform_indices = @transform_2, window_bounds = array<i64: 1, 768>}, {transform_indices = @transform_3, window_bounds = array<i64: 1, 8>}]} {
    %c0 = arith.constant 0 : index
    %c0_0 = arith.constant 0 : index
    %0 = vector.load %arg1[%c0, %c0_0] : memref<8x768xf32, #tpu.memory_space<vmem>>, vector<8x768xf32>
    %c0_1 = arith.constant 0 : index
    %c0_2 = arith.constant 0 : index
    %1 = vector.load %arg2[%c0_1, %c0_2] : memref<8x768xf32, #tpu.memory_space<vmem>>, vector<8x768xf32>
    %2 = arith.subf %0, %1 : vector<8x768xf32>
    %c0_3 = arith.constant 0 : index
    %c0_4 = arith.constant 0 : index
    %3 = vector.load %arg3[%c0_3, %c0_4] : memref<1x768xf32, #tpu.memory_space<vmem>>, vector<1x768xf32>
    %4 = vector.broadcast %3 : vector<1x768xf32> to vector<8x768xf32>
    %5 = arith.mulf %2, %4 : vector<8x768xf32>
    %cst = arith.constant dense<0.000000e+00> : vector<8xf32>
    %6 = vector.multi_reduction <add>, %5, %cst [1] : vector<8x768xf32> to vector<8xf32>
    %7 = vector.shape_cast %6 : vector<8xf32> to vector<8x1xf32>
    %8 = arith.negf %7 : vector<8x1xf32>
    %9 = math.exp %8 : vector<8x1xf32>
    %cst_5 = arith.constant 1.000000e+00 : f32
    %10 = vector.broadcast %cst_5 : f32 to vector<8x1xf32>
    %11 = arith.addf %10, %9 : vector<8x1xf32>
    %12 = arith.divf %10, %11 : vector<8x1xf32>
    %13 = tpu.transpose %12, [1, 0] : vector<8x1xf32> -> vector<1x8xf32>
    %c0_6 = arith.constant 0 : index
    %c0_7 = arith.constant 0 : index
    %14 = vector.load %arg4[%c0_6, %c0_7] : memref<1x8xf32, #tpu.memory_space<vmem>>, vector<1x8xf32>
    tpu.vector_store %arg4[%c0_6, %c0_7], %13 {strides = array<i32>} : memref<1x8xf32, #tpu.memory_space<vmem>>, vector<1x8xf32>,
    return
  }
  func.func @transform_0(%arg0: i32) -> (i32, i32) {
    %c0_i32 = arith.constant 0 : i32
    %c0_i32_0 = arith.constant 0 : i32
    return %arg0, %c0_i32 : i32, i32
  }
  func.func @transform_1(%arg0: i32) -> (i32, i32) {
    %c0_i32 = arith.constant 0 : i32
    %c0_i32_0 = arith.constant 0 : i32
    return %arg0, %c0_i32 : i32, i32
  }
  func.func @transform_2(%arg0: i32) -> (i32, i32) {
    %c0_i32 = arith.constant 0 : i32
    %c0_i32_0 = arith.constant 0 : i32
    %c0_i32_1 = arith.constant 0 : i32
    return %c0_i32, %c0_i32_0 : i32, i32
  }
  func.func @transform_3(%arg0: i32) -> (i32, i32) {
    %c0_i32 = arith.constant 0 : i32
    %c0_i32_0 = arith.constant 0 : i32
    return %arg0, %c0_i32 : i32, i32
  }
}

</mosaic_0001>

<bundles_post_ra>
// kernel: tpu_custom_call.1
= control target key start
LH: loop header
LB: loop body
LE: loop exit
PB: predicated region body
PF: predicated region fallthrough
CT: control target
= control target key end

     0   :  { %8 = vsyncpa [#allocation3], 0  ;;  %s301_s0 = inlined_call_operand.hbm [shape: f32[8,768], index: 0, kind: input, shape index: {}]   ;;  %s302_s1 = inlined_call_operand.hbm [shape: f32[8,768], index: 1, kind: input, shape index: {}]   ;;  %s303_s2 = inlined_call_operand.hbm [shape: f32[1,768], index: 2, kind: input, shape index: {}]   ;;  %s304_s3 = inlined_call_operand.hbm [shape: f32[1,8], index: 3, kind: output, shape index: {}]  }
   0x1   :  { %9 = vsyncpa [#allocation6], 0 }
   0x2   :  { %10 = vsyncpa [#allocation4], 0  ;;  %s265_s12 = smov [#allocation5]   ;;  %s266_s14 = smov [#allocation2]  }
   0x3   :  { %s27_s13 = sshll.u32 %s265_s12, 4  ;;  %s17_s15 = sshll.u32 %s266_s14, 4  ;;  %s28_s13 = int_to_ptr.vmem [resolvable:$true] %s27_s13  ;;  %s18_s15 = int_to_ptr.vmem [resolvable:$true] %s17_s15 }
   0x4   :  { %s187_s16 = scalar_lea.vmem %s28_s13, 768  ;;  %p192_p1 = scmp.lt.s32.totalorder %s28_s13, %s28_s13 }
   0x5   :  { %p188_p0 = scmp.ne.s32.totalorder %s28_s13, %s187_s16  ;;  %p193_p2 = scmp.lt.s32.totalorder %s187_s16, %s187_s16 }
   0x7   :  { %p194_p3 = por %p193_p2, %p192_p1 }
   0x9   :  { %p195_p4 = pnand %p194_p3, %p188_p0 }
   0xb   :  { %198 = shalt.err (!%p195_p4)
}
   0xc   :  { %30 = dma.hbm_to_vmem [thread:$0]  %s302_s1, 768, %s28_s13, [#allocation6]  }
   0xd   :  { %s207_s19 = scalar_lea.vmem %s18_s15, 768  ;;  %p212_p6 = scmp.lt.s32.totalorder %s18_s15, %s18_s15 }
   0xe   :  { %p208_p5 = scmp.ne.s32.totalorder %s18_s15, %s207_s19  ;;  %p213_p7 = scmp.lt.s32.totalorder %s207_s19, %s207_s19 }
  0x10   :  { %p214_p8 = por %p213_p7, %p212_p6 }
  0x12   :  { %p215_p9 = pnand %p214_p8, %p208_p5 }
  0x14   :  { %218 = shalt.err (!%p215_p9)
}
  0x15   :  { %20 = dma.hbm_to_vmem [thread:$0]  %s301_s0, 768, %s18_s15, [#allocation3]  }
  0x16   :  { %s267_s22 = smov [#allocation7]  }
  0x17   :  { %s37_s23 = sshll.u32 %s267_s22, 4  ;;  %s38_s23 = int_to_ptr.vmem [resolvable:$true] %s37_s23 }
  0x18   :  { %s227_s24 = scalar_lea.vmem %s38_s23, 96  ;;  %p232_p11 = scmp.lt.s32.totalorder %s38_s23, %s38_s23 }
  0x19   :  { %p228_p10 = scmp.ne.s32.totalorder %s38_s23, %s227_s24  ;;  %p233_p12 = scmp.lt.s32.totalorder %s227_s24, %s227_s24 }
  0x1b   :  { %p234_p13 = por %p233_p12, %p232_p11 }
  0x1d   :  { %p235_p0 = pnand %p234_p13, %p228_p10 }
  0x1f   :  { %238 = shalt.err (!%p235_p0)
}
  0x20   :  { %40 = dma.hbm_to_vmem [thread:$0]  %s303_s2, 96, %s38_s23, [#allocation6]  }
  0x21   :  { %259 = dma.done.wait [#allocation3], 768  }
  0x22   :  { %260 = vsyncadd [#allocation3], 4294966528 }
  0x23   :  { %261 = dma.done.wait [#allocation6], 864  }
  0x24   :  { %262 = vsyncadd [#allocation6], 4294966432  ;;  %v70_v0 = vlaneseq  ;;  %v50_v2 = vld [vmem:[#allocation2] sm:$0xff]  ;;  %v51_v3 = vld [vmem:[#allocation2 + $0x8] sm:$0xff]  ;;  %s268_s0 = smov [#allocation8]   ;;  %vm151_vm0 = vcmask 57344  }
  0x25   :  { %v52_v4 = vld [vmem:[#allocation2 + $0x10] sm:$0xff]  ;;  %v53_v5 = vld [vmem:[#allocation2 + $0x18] sm:$0xff]  ;;  %v58_v12 = vld [vmem:[#allocation5 + $0x10] sm:$0xff]  ;;  %s159_s2 = sshll.u32 %s268_s0, 4  ;;  %s160_s2 = int_to_ptr.vmem [resolvable:$true] %s159_s2 }
  0x26   :  { %v71_v1 = vshrl.u32 %v70_v0, 7  ;;  %v56_v10 = vld [vmem:[#allocation5] sm:$0xff]  ;;  %v57_v11 = vld [vmem:[#allocation5 + $0x8] sm:$0xff]  ;;  %v54_v13 = vld [vmem:[#allocation2 + $0x20] sm:$0xff]  ;;  %v64_v18 = vsub.f32 %v52_v4, %v58_v12  ;;  %s239_s26 = scalar_lea.vmem %s160_s2, 16  ;;  %s243_s27 = scalar_lea.vmem %s160_s2, 32 }
  0x27   :  { %v59_v14 = vld [vmem:[#allocation5 + $0x18] sm:$0xff]  ;;  %v60_v15 = vld [vmem:[#allocation5 + $0x20] sm:$0xff]  ;;  %v62_v16 = vsub.f32 %v50_v2, %v56_v10  ;;  %v63_v17 = vsub.f32 %v51_v3, %v57_v11  ;;  %v68_v21 = vld [vmem:[#allocation7] sm:$0x3f]  ;;  %p240_p1 = scmp.ne.s32.totalorder %s160_s2, %s239_s26  ;;  %p244_p2 = scmp.lt.s32.totalorder %s160_s2, %s160_s2 }
  0x28   :  { %v72_v6 = vsub.s32 0, %v71_v1  ;;  %v76_v7 = vsub.s32 1, %v71_v1  ;;  %v80_v8 = vsub.s32 2, %v71_v1  ;;  %v84_v9 = vsub.s32 3, %v71_v1  ;;  %v55_v27 = vld [vmem:[#allocation2 + $0x28] sm:$0xff]  ;;  %v61_v28 = vld [vmem:[#allocation5 + $0x28] sm:$0xff]  ;;  %p245_p3 = scmp.lt.s32.totalorder %s243_s27, %s239_s26 }
  0x29   :  { %v88_v19 = vsub.s32 4, %v71_v1  ;;  %v65_v20 = vsub.f32 %v53_v5, %v59_v14  ;;  %v92_v22 = vsub.s32 5, %v71_v1  ;;  %v66_v29 = vsub.f32 %v54_v13, %v60_v15 }
  0x2a   :  { %v73_v23 = vrot.slane %v68_v21, %v72_v6  ;;  %v77_v24 = vrot.slane %v68_v21, %v76_v7  ;;  %v81_v25 = vrot.slane %v68_v21, %v80_v8  ;;  %v85_v26 = vrot.slane %v68_v21, %v84_v9  ;;  %p246_p4 = por %p245_p3, %p244_p2 }
  0x2b   :  { %v89_v30 = vrot.slane %v68_v21, %v88_v19  ;;  %v67_v34 = vsub.f32 %v55_v27, %v61_v28  ;;  %v93_v35 = vrot.slane %v68_v21, %v92_v22 }
  0x2c   :  { %v100_v31 = vmul.f32 %v73_v23, %v62_v16  ;;  %v101_v32 = vmul.f32 %v77_v24, %v63_v17  ;;  %v102_v33 = vmul.f32 %v81_v25, %v64_v18  ;;  %v103_v36 = vmul.f32 %v85_v26, %v65_v20  ;;  %p247_p5 = pnand %p246_p4, %p240_p1 }
  0x2d   :  { %v104_v38 = vmul.f32 %v89_v30, %v66_v29  ;;  %v105_v40 = vmul.f32 %v93_v35, %v67_v34 }
  0x2e   :  { %v106_v37 = vadd.f32 %v101_v32, %v100_v31 }
  0x30   :  { %v107_v39 = vadd.f32 %v106_v37, %v102_v33 }
  0x32   :  { %v108_v41 = vadd.f32 %v107_v39, %v103_v36 }
  0x34   :  { %v109_v42 = vadd.f32 %v108_v41, %v104_v38 }
  0x36   :  { %v110_v43 = vadd.f32 %v109_v42, %v105_v40 }
  0x38   :  { %111 = vadd.xlane.f32.xlu0 %v110_v43 }
  0xc1   :  { %v112_v44 = vpop.xlane.xlu0 %111 }
  0xc2   :  { %v169_v45 = vmul.f32 -1.442695, %v112_v44 }
  0xc4   :  { %175 = vpow2.f32 %v169_v45 }
  0xd1   :  { %v176_v46 = vpop.eup %175 }
  0xd2   :  { %v116_v47 = vadd.f32 1.0, %v176_v46 }
  0xd4   :  { %177 = vrcp.f32 %v116_v47 }
  0xe1   :  { %v178_v48 = vpop.eup %177 }
  0xe2   :  { %119 = vxpose.xlu0.b32.start.end [1/1] (short) (narrow) %v178_v48, 8 }
 0x15e   :  { %v135_v49 = vpop.trf.xlu0 }
 0x15f   :  { %152 = vst.msk [vmem:[#allocation8] sm:$0x1] %vm151_vm0, %v135_v49 }
 0x160   :  { %250 = shalt.err (!%p247_p5)
}
 0x161   :  { %162 = dma.vmem_to_hbm [thread:$0]  %s160_s2, 16, %s304_s3, [#allocation4]  }
 0x162   :  { %263 = dma.done.wait [#allocation4], 16  }
 0x163   :  { %264 = vsyncadd [#allocation4], 4294967280 }
 0x164   :  { %166 = vsyncpa [#allocation3], 1 }
 0x165   :  { %167 = vsyncpa [#allocation6], 1 }
 0x166   :  { %168 = vsyncpa [#allocation4], 1 }

</bundles_post_ra>
